<compile_context>
chip_gen: v7x
topology: tpu7x:2x2x1
jax: 0.10.0
libtpu: 0.0.40
codegen_flags: <defaults>
</compile_context>

<pallas_src>
import jax
import jax.numpy as jnp
from jax import lax
from jax.experimental import pallas as pl
from jax.experimental.pallas import tpu as pltpu

IN_FEATURES = 3 * 32 * 32   # 3072, fixed by the module


def linear_kernel(x_ref, w_ref, b_ref, o_ref):
    """out = x @ w.T + b  in one shot.  x:(B,K), w:(N,K), b:(1,N), o:(B,N)."""
    out = lax.dot_general(
        x_ref[...], w_ref[...],
        dimension_numbers=(((1,), (1,)), ((), ())),   # contract K with K
        preferred_element_type=jnp.float32,
    )
    o_ref[...] = (out + b_ref[...]).astype(o_ref.dtype)


def mock_diffusion_forward(x, weight, bias):
    """x: (B, 3, 32, 32) f32; weight: (N, K) (native PyTorch layout); bias: (N,)."""
    B = x.shape[0]
    K = IN_FEATURES
    N = weight.shape[0]

    x_flat = x.reshape(B, K)          # same row-major flatten as torch .view
    b2d = bias.reshape(1, N)

    return pl.pallas_call(
        linear_kernel,
        out_shape=jax.ShapeDtypeStruct((B, N), x.dtype),
        in_specs=[
            pl.BlockSpec((B, K), lambda: (0, 0)),   # whole x in VMEM
            pl.BlockSpec((N, K), lambda: (0, 0)),   # whole weight, native (N, K)
            pl.BlockSpec((1, N), lambda: (0, 0)),   # bias
        ],
        out_specs=pl.BlockSpec((B, N), lambda: (0, 0)),
        compiler_params=pltpu.CompilerParams(
            vmem_limit_bytes=16 * 1024 * 1024,
        ),
    )(x_flat, weight, b2d)


if __name__ == "__main__":
    B = 2
    OUTPUT_DIM = 32

    key = jax.random.PRNGKey(0)
    kx, kw, kb = jax.random.split(key, 3)

    # Deterministic parameter init (matches Linear(3072, OUTPUT_DIM) shapes).
    bound = 1.0 / (IN_FEATURES ** 0.5)
    weight = jax.random.uniform(
        kw, (OUTPUT_DIM, IN_FEATURES), jnp.float32, minval=-bound, maxval=bound
    )
    bias = jax.random.uniform(
        kb, (OUTPUT_DIM,), jnp.float32, minval=-bound, maxval=bound
    )

    x = jax.random.normal(kx, (B, 3, 32, 32), jnp.float32)

    out = mock_diffusion_forward(x, weight, bias)
    out = jax.block_until_ready(out)

    # Reference check in plain JAX.
    ref = x.reshape(B, -1) @ weight.T + bias
    assert out.shape == (B, OUTPUT_DIM)
    assert jnp.allclose(out, ref, atol=1e-4, rtol=1e-4)

    print("KERNEL_OK")
</pallas_src>

<mosaic_0001>
module attributes {stable_mosaic.version = 11 : i64} {
  func.func @linear_kernel(%arg0: memref<2x3072xf32, #tpu.memory_space<vmem>>, %arg1: memref<32x3072xf32, #tpu.memory_space<vmem>>, %arg2: memref<1x32xf32, #tpu.memory_space<vmem>>, %arg3: memref<2x32xf32, #tpu.memory_space<vmem>>) attributes {dimension_semantics = [], scalar_prefetch = 0 : i64, scratch_operands = 0 : i64, tpu.core_type = #tpu.core_type<tc>} {
    %c0 = arith.constant 0 : index
    %c0_0 = arith.constant 0 : index
    %0 = vector.load %arg0[%c0, %c0_0] : memref<2x3072xf32, #tpu.memory_space<vmem>>, vector<2x3072xf32>
    %c0_1 = arith.constant 0 : index
    %c0_2 = arith.constant 0 : index
    %1 = vector.load %arg1[%c0_1, %c0_2] : memref<32x3072xf32, #tpu.memory_space<vmem>>, vector<32x3072xf32>
    %cst = arith.constant dense<0.000000e+00> : vector<2x32xf32>
    %2 = tpu.matmul %0, %1, %cst {dimension_numbers = #tpu.dot_dimension_numbers<[1], [1], [0], [0], [0, 0, 1, 0], [], []>} : vector<2x3072xf32>, vector<32x3072xf32>, vector<2x32xf32> -> vector<2x32xf32>
    %c0_3 = arith.constant 0 : index
    %c0_4 = arith.constant 0 : index
    %3 = vector.load %arg2[%c0_3, %c0_4] : memref<1x32xf32, #tpu.memory_space<vmem>>, vector<1x32xf32>
    %4 = vector.broadcast %3 : vector<1x32xf32> to vector<2x32xf32>
    %5 = arith.addf %2, %4 : vector<2x32xf32>
    %c0_5 = arith.constant 0 : index
    %c0_6 = arith.constant 0 : index
    %6 = vector.load %arg3[%c0_5, %c0_6] : memref<2x32xf32, #tpu.memory_space<vmem>>, vector<2x32xf32>
    tpu.vector_store %arg3[%c0_5, %c0_6], %5 {strides = array<i32>} : memref<2x32xf32, #tpu.memory_space<vmem>>, vector<2x32xf32>,
    return
  }
}

</mosaic_0001>

<bundles_post_ra>
// kernel: tpu_custom_call.1
= control target key start
LH: loop header
LB: loop body
LE: loop exit
PB: predicated region body
PF: predicated region fallthrough
CT: control target
= control target key end

     0   :  { %8 = vsyncpa [#allocation3], 0  ;;  %s1429_s0 = inlined_call_operand.hbm [shape: f32[2,3072], index: 0, kind: input, shape index: {}]   ;;  %s1430_s1 = inlined_call_operand.hbm [shape: f32[32,3072], index: 1, kind: input, shape index: {}]   ;;  %s1431_s2 = inlined_call_operand.vmem [shape: f32[1,32], index: 2, kind: input, shape index: {}]   ;;  %s1432_s3 = inlined_call_operand.hbm [shape: f32[2,32], index: 3, kind: output, shape index: {}]  }
   0x1   :  { %9 = vsyncpa [#allocation6], 0 }
   0x2   :  { %10 = vsyncpa [#allocation4], 0  ;;  %s1343_s12 = smov [#allocation2]   ;;  %s1344_s14 = smov [#allocation5]  }
   0x3   :  { %s17_s13 = sshll.u32 %s1343_s12, 4  ;;  %s26_s15 = sshll.u32 %s1344_s14, 4  ;;  %s18_s13 = int_to_ptr.vmem [resolvable:$true] %s17_s13  ;;  %s1369_s15 = int_to_ptr.vmem [resolvable:$true] %s26_s15 }
   0x4   :  { %s1271_s18 = scalar_lea.hbm %s1429_s0, 768 }
   0x5   :  { %p1272_p0 = scmp.ne.s32.totalorder %s1429_s0, %s1271_s18  ;;  %p1275_p1 = scmp.lt.u32.totalorder %s1271_s18, %s1429_s0 }
   0x7   :  { %p1277_p2 = pnand %p1275_p1, %p1272_p0 }
   0x9   :  { %1280 = shalt.err (!%p1277_p2)
}
   0xa   :  { %s1281_s23 = scalar_lea.vmem %s18_s13, 768  ;;  %p1286_p4 = scmp.lt.s32.totalorder %s18_s13, %s18_s13 }
   0xb   :  { %p1282_p3 = scmp.ne.s32.totalorder %s18_s13, %s1281_s23  ;;  %p1287_p5 = scmp.lt.s32.totalorder %s1281_s23, %s1281_s23 }
   0xd   :  { %p1288_p6 = por %p1287_p5, %p1286_p4 }
   0xf   :  { %p1289_p7 = pnand %p1288_p6, %p1282_p3 }
  0x11   :  { %1292 = shalt.err (!%p1289_p7)
}
  0x12   :  { %20 = dma.hbm_to_vmem [thread:$0]  %s1429_s0, 768, %s18_s13, [#allocation3]  }
  0x13   :  { %s1293_s28 = scalar_lea.hbm %s1430_s1, 12288 }
  0x14   :  { %p1294_p8 = scmp.ne.s32.totalorder %s1430_s1, %s1293_s28  ;;  %p1297_p9 = scmp.lt.u32.totalorder %s1293_s28, %s1430_s1 }
  0x16   :  { %p1299_p10 = pnand %p1297_p9, %p1294_p8 }
  0x18   :  { %1302 = shalt.err (!%p1299_p10)
}
  0x19   :  { %s1303_s6 = scalar_lea.vmem %s1369_s15, 12288  ;;  %p1308_p12 = scmp.lt.s32.totalorder %s1369_s15, %s1369_s15 }
  0x1a   :  { %p1304_p11 = scmp.ne.s32.totalorder %s1369_s15, %s1303_s6  ;;  %p1309_p13 = scmp.lt.s32.totalorder %s1303_s6, %s1303_s6 }
  0x1c   :  { %p1310_p0 = por %p1309_p13, %p1308_p12 }
  0x1e   :  { %p1311_p1 = pnand %p1310_p0, %p1304_p11 }
  0x20   :  { %1314 = shalt.err (!%p1311_p1)
}
  0x21   :  { %s1345_s0 = smov 3072   ;;  %s1346_s7 = smov 192  }
  0x22   :  { %32 = dma.hbm_to_vmem [thread:$0]  %s1430_s1, 12288, %s1369_s15, [#allocation6], %s1345_s0, %s1345_s0, %s1346_s7  }
  0x23   :  { %1337 = dma.done.wait [#allocation3], 768  }
  0x24   :  { %1338 = vsyncadd [#allocation3], 4294966528 }
  0x25   :  { %1339 = dma.done.wait [#allocation6], 12288  }
  0x26   :  { %1340 = vsyncadd [#allocation6], 4294955008  ;;  %v1347_v0 = vmov 1983009808   ;;  %v160_v2 = vlaneseq  ;;  %v48_v5 = vld [vmem:[#allocation5 + $0x8] sm:$0xff]  ;;  %v47_v10 = vld [vmem:[#allocation5] sm:$0xff] }
  0x27   :  { %v158_v1 = vunpack.c.l.s4 %v1347_v0  ;;  %v72_v6 = vld [vmem:[#allocation5 + $0xc8] sm:$0xff]  ;;  %v71_v11 = vld [vmem:[#allocation5 + $0xc0] sm:$0xff]  ;;  %v41_v28 = vld [vmem:[#allocation2] sm:$0xff]  ;;  %s1348_s11 = smov [#allocation7]   ;;  %vm1122_vm0 = vcmask 254976  }
  0x28   :  { %v161_v4 = vshrl.u32 %v160_v2, 7  ;;  %v60_v7 = vld [vmem:[#allocation5 + $0x68] sm:$0xff]  ;;  %v1141_v8 = vpack.c.bf16 %v72_v6, %v48_v5  ;;  %v1143_v13 = vpack.c.bf16 %v71_v11, %v47_v10  ;;  %v59_v14 = vld [vmem:[#allocation5 + $0x60] sm:$0xff]  ;;  %v50_v30 = vld [vmem:[#allocation5 + $0x18] sm:$0xff]  ;;  %v156_v41 = vcombine.high %v41_v28, %v41_v28  ;;  %s1130_s12 = sshll.u32 %s1348_s11, 4  ;;  %s1131_s12 = int_to_ptr.vmem [resolvable:$true] %s1130_s12 }
  0x29   :  { %v159_v3 = vunpack.c.0.s8 %v158_v1  ;;  %v84_v9 = vld [vmem:[#allocation5 + $0x128] sm:$0xff]  ;;  %v83_v15 = vld [vmem:[#allocation5 + $0x120] sm:$0xff]  ;;  %v74_v31 = vld [vmem:[#allocation5 + $0xd8] sm:$0xff]  ;;  %s1315_s13 = scalar_lea.vmem %s1131_s12, 32  ;;  %p1320_p3 = scmp.lt.s32.totalorder %s1131_s12, %s1131_s12 }
  0x2a   :  { %v1189_v12 = vpack.c.bf16 %v84_v9, %v60_v7  ;;  %v96_v16 = vld [vmem:[#allocation5 + $0x188] sm:$0xff]  ;;  %1142 = vmatprep.subr.bf16.mxu1 %v1141_v8  ;;  %v1191_v18 = vpack.c.bf16 %v83_v15, %v59_v14  ;;  %v95_v24 = vld [vmem:[#allocation5 + $0x180] sm:$0xff]  ;;  %v62_v34 = vld [vmem:[#allocation5 + $0x78] sm:$0xff]  ;;  %v1149_v39 = vpack.c.bf16 %v74_v31, %v50_v30  ;;  %p1316_p2 = scmp.ne.s32.totalorder %s1131_s12, %s1315_s13  ;;  %p1321_p4 = scmp.lt.s32.totalorder %s1315_s13, %s1315_s13 }
  0x2b   :  { %v1400_v17 = vsub.s32 %v159_v3, %v161_v4  ;;  %v120_v19 = vld [vmem:[#allocation5 + $0x248] sm:$0xff]  ;;  %1144 = vmatpush1.bf16.xpose.msra.mxu1 %v1143_v13  ;;  %v119_v25 = vld [vmem:[#allocation5 + $0x240] sm:$0xff]  ;;  %v86_v35 = vld [vmem:[#allocation5 + $0x138] sm:$0xff] }
  0x2c   :  { %v108_v20 = vld [vmem:[#allocation5 + $0x1e8] sm:$0xff]  ;;  %1190 = vmatprep.subr.bf16.mxu0 %v1189_v12  ;;  %v1145_v22 = vpack.c.bf16 %v120_v19, %v96_v16  ;;  %v107_v26 = vld [vmem:[#allocation5 + $0x1e0] sm:$0xff]  ;;  %v1147_v36 = vpack.c.bf16 %v119_v25, %v95_v24  ;;  %v1197_v42 = vpack.c.bf16 %v86_v35, %v62_v34  ;;  %v49_v44 = vld [vmem:[#allocation5 + $0x10] sm:$0xff]  ;;  %p1322_p5 = por %p1321_p4, %p1320_p3 }
  0x2d   :  { %v132_v21 = vld [vmem:[#allocation5 + $0x2a8] sm:$0xff]  ;;  %1192 = vmatpush1.bf16.xpose.msra.mxu0 %v1191_v18  ;;  %v131_v27 = vld [vmem:[#allocation5 + $0x2a0] sm:$0xff]  ;;  %v163_v29 = vrot.slane %v41_v28, %v1400_v17  ;;  %v73_v45 = vld [vmem:[#allocation5 + $0xd0] sm:$0xff]  ;;  %v170_v50 = vrot.slane %v156_v41, %v1400_v17 }
  0x2e   :  { %v1193_v23 = vpack.c.bf16 %v132_v21, %v108_v20  ;;  %1146 = vmatprep.subr.bf16.mxu1 %v1145_v22  ;;  %v44_v32 = vld [vmem:[#allocation2 + $0x18] sm:$0xff]  ;;  %v1195_v38 = vpack.c.bf16 %v131_v27, %v107_v26  ;;  %v61_v46 = vld [vmem:[#allocation5 + $0x70] sm:$0xff]  ;;  %v98_v48 = vld [vmem:[#allocation5 + $0x198] sm:$0xff]  ;;  %v1151_v54 = vpack.c.bf16 %v73_v45, %v49_v44  ;;  %p1323_p6 = pnand %p1322_p5, %p1316_p2 }
  0x2f   :  { %v214_v33 = vrot.slane %v44_v32, %v1400_v17  ;;  %v171_v37 = vcombine.high %v163_v29, %v163_v29  ;;  %v207_v43 = vcombine.high %v44_v32, %v44_v32  ;;  %v85_v47 = vld [vmem:[#allocation5 + $0x130] sm:$0xff]  ;;  %v122_v49 = vld [vmem:[#allocation5 + $0x258] sm:$0xff]  ;;  %v172_v58 = vcombine.high %v170_v50, %v170_v50  ;;  %v52_v0 = vld [vmem:[#allocation5 + $0x28] sm:$0xff] }
  0x30   :  { %1194 = vmatprep.subr.bf16.mxu0 %v1193_v23  ;;  %v110_v51 = vld [vmem:[#allocation5 + $0x1f8] sm:$0xff]  ;;  %v1199_v55 = vpack.c.bf16 %v85_v47, %v61_v46  ;;  %v1153_v56 = vpack.c.bf16 %v122_v49, %v98_v48  ;;  %v97_v60 = vld [vmem:[#allocation5 + $0x190] sm:$0xff]  ;;  %v76_v1 = vld [vmem:[#allocation5 + $0xe8] sm:$0xff] }
  0x31   :  { %v222_v40 = vcombine.high %v214_v33, %v214_v33  ;;  %346 = vmatprep.mubr.f32.mxu1 %v171_v37  ;;  %v134_v52 = vld [vmem:[#allocation5 + $0x2b8] sm:$0xff]  ;;  %v221_v53 = vrot.slane %v207_v43, %v1400_v17  ;;  %v121_v61 = vld [vmem:[#allocation5 + $0x250] sm:$0xff]  ;;  %v64_v2 = vld [vmem:[#allocation5 + $0x88] sm:$0xff]  ;;  %v1157_v6 = vpack.c.bf16 %v76_v1, %v52_v0 }
  0x32   :  { %v1201_v57 = vpack.c.bf16 %v134_v52, %v110_v51  ;;  %v109_v62 = vld [vmem:[#allocation5 + $0x1f0] sm:$0xff]  ;;  %v88_v3 = vld [vmem:[#allocation5 + $0x148] sm:$0xff]  ;;  %v1155_v4 = vpack.c.bf16 %v121_v61, %v97_v60  ;;  %v42_v8 = vld [vmem:[#allocation2 + $0x8] sm:$0xff] }
  0x33   :  { %766 = vmatprep.mubr.f32.mxu0 %v222_v40  ;;  %1148 = vmatpush1.bf16.xpose.msra.mxu1 %v1147_v36  ;;  %v223_v59 = vcombine.high %v221_v53, %v221_v53  ;;  %v133_v63 = vld [vmem:[#allocation5 + $0x2b0] sm:$0xff]  ;;  %v1205_v7 = vpack.c.bf16 %v88_v3, %v64_v2  ;;  %v51_v10 = vld [vmem:[#allocation5 + $0x20] sm:$0xff]  ;;  %v100_v14 = vld [vmem:[#allocation5 + $0x1a8] sm:$0xff]  ;;  %v180_v16 = vrot.slane %v42_v8, %v1400_v17 }
  0x34   :  { %1150 = vmatprep.subr.bf16.mxu1 %v1149_v39  ;;  %v1203_v5 = vpack.c.bf16 %v133_v63, %v109_v62  ;;  %v45_v9 = vld [vmem:[#allocation2 + $0x20] sm:$0xff]  ;;  %v75_v11 = vld [vmem:[#allocation5 + $0xe0] sm:$0xff]  ;;  %v124_v15 = vld [vmem:[#allocation5 + $0x268] sm:$0xff]  ;;  %v173_v39 = vcombine.high %v42_v8, %v42_v8 }
  0x35   :  { %1196 = vmatpush1.bf16.xpose.msra.mxu0 %v1195_v38  ;;  %v63_v12 = vld [vmem:[#allocation5 + $0x80] sm:$0xff]  ;;  %v112_v18 = vld [vmem:[#allocation5 + $0x208] sm:$0xff]  ;;  %v231_v20 = vrot.slane %v45_v9, %v1400_v17  ;;  %v1159_v21 = vpack.c.bf16 %v75_v11, %v51_v10  ;;  %v1161_v23 = vpack.c.bf16 %v124_v15, %v100_v14  ;;  %v188_v25 = vcombine.high %v180_v16, %v180_v16  ;;  %v54_v31 = vld [vmem:[#allocation5 + $0x38] sm:$0xff] }
  0x36   :  { %1198 = vmatprep.subr.bf16.mxu0 %v1197_v42  ;;  %v87_v13 = vld [vmem:[#allocation5 + $0x140] sm:$0xff]  ;;  %v136_v19 = vld [vmem:[#allocation5 + $0x2c8] sm:$0xff]  ;;  %v78_v32 = vld [vmem:[#allocation5 + $0xf8] sm:$0xff]  ;;  %v224_v40 = vcombine.high %v45_v9, %v45_v9  ;;  %v187_v47 = vrot.slane %v173_v39, %v1400_v17 }
  0x37   :  { %v1207_v22 = vpack.c.bf16 %v87_v13, %v63_v12  ;;  %v1209_v24 = vpack.c.bf16 %v136_v19, %v112_v18  ;;  %v239_v26 = vcombine.high %v231_v20, %v231_v20  ;;  %v99_v27 = vld [vmem:[#allocation5 + $0x1a0] sm:$0xff]  ;;  %v90_v34 = vld [vmem:[#allocation5 + $0x158] sm:$0xff]  ;;  %v1165_v37 = vpack.c.bf16 %v78_v32, %v54_v31  ;;  %v53_v41 = vld [vmem:[#allocation5 + $0x30] sm:$0xff] }
  0x38   :  { %v123_v28 = vld [vmem:[#allocation5 + $0x260] sm:$0xff]  ;;  %v77_v42 = vld [vmem:[#allocation5 + $0xf0] sm:$0xff]  ;;  %v102_v45 = vld [vmem:[#allocation5 + $0x1b8] sm:$0xff] }
  0x39   :  { %v135_v30 = vld [vmem:[#allocation5 + $0x2c0] sm:$0xff]  ;;  %v1163_v35 = vpack.c.bf16 %v123_v28, %v99_v27  ;;  %v65_v43 = vld [vmem:[#allocation5 + $0x90] sm:$0xff]  ;;  %v126_v46 = vld [vmem:[#allocation5 + $0x278] sm:$0xff]  ;;  %v1167_v51 = vpack.c.bf16 %v77_v42, %v53_v41 }
  0x3a   :  { %347 = vmatmul.mubr.f32.vlgmr.msra.gmra.mrb[0].mxu1 %v163_v29  ;;  %v111_v29 = vld [vmem:[#allocation5 + $0x200] sm:$0xff]  ;;  %v89_v44 = vld [vmem:[#allocation5 + $0x150] sm:$0xff]  ;;  %v114_v48 = vld [vmem:[#allocation5 + $0x218] sm:$0xff] }
  0x3b   :  { %1152 = vmatpush1.bf16.xpose.msra.mxu1 %v1151_v54  ;;  %416 = vmatprep.mubr.f32.mxu1 %v172_v58  ;;  %v1211_v36 = vpack.c.bf16 %v135_v30, %v111_v29  ;;  %v138_v49 = vld [vmem:[#allocation5 + $0x2d8] sm:$0xff]  ;;  %v1215_v52 = vpack.c.bf16 %v89_v44, %v65_v43  ;;  %v125_v58 = vld [vmem:[#allocation5 + $0x270] sm:$0xff]  ;;  %v56_v61 = vld [vmem:[#allocation5 + $0x48] sm:$0xff] }
  0x3c   :  { %767 = vmatmul.mubr.f32.vlgmr.msra.gmra.mrb[0].mxu0 %v214_v33  ;;  %1154 = vmatprep.subr.bf16.mxu1 %v1153_v56  ;;  %v66_v33 = vld [vmem:[#allocation5 + $0x98] sm:$0xff]  ;;  %v1217_v54 = vpack.c.bf16 %v138_v49, %v114_v48  ;;  %v137_v60 = vld [vmem:[#allocation5 + $0x2d0] sm:$0xff]  ;;  %v80_v62 = vld [vmem:[#allocation5 + $0x108] sm:$0xff] }
  0x3d   :  { %1200 = vmatpush1.bf16.xpose.msra.mxu0 %v1199_v55  ;;  %836 = vmatprep.mubr.f32.mxu0 %v223_v59  ;;  %v1213_v38 = vpack.c.bf16 %v90_v34, %v66_v33  ;;  %v189_v55 = vcombine.high %v187_v47, %v187_v47  ;;  %v113_v59 = vld [vmem:[#allocation5 + $0x210] sm:$0xff]  ;;  %v68_v63 = vld [vmem:[#allocation5 + $0xa8] sm:$0xff]  ;;  %v1173_v3 = vpack.c.bf16 %v80_v62, %v56_v61  ;;  %v79_v8 = vld [vmem:[#allocation5 + $0x100] sm:$0xff] }
  0x3e   :  { %1202 = vmatprep.subr.bf16.mxu0 %v1201_v57  ;;  %v101_v57 = vld [vmem:[#allocation5 + $0x1b0] sm:$0xff]  ;;  %v92_v0 = vld [vmem:[#allocation5 + $0x168] sm:$0xff]  ;;  %v1219_v2 = vpack.c.bf16 %v137_v60, %v113_v59  ;;  %v67_v9 = vld [vmem:[#allocation5 + $0xa0] sm:$0xff] }
  0x3f   :  { %v1171_v1 = vpack.c.bf16 %v125_v58, %v101_v57  ;;  %v91_v10 = vld [vmem:[#allocation5 + $0x160] sm:$0xff]  ;;  %v104_v11 = vld [vmem:[#allocation5 + $0x1c8] sm:$0xff]  ;;  %v58_v28 = vld [vmem:[#allocation5 + $0x58] sm:$0xff] }
  0x40   :  { %v128_v12 = vld [vmem:[#allocation5 + $0x288] sm:$0xff]  ;;  %v1223_v19 = vpack.c.bf16 %v91_v10, %v67_v9  ;;  %v139_v27 = vld [vmem:[#allocation5 + $0x2e0] sm:$0xff]  ;;  %v82_v29 = vld [vmem:[#allocation5 + $0x118] sm:$0xff] }
  0x41   :  { %v116_v14 = vld [vmem:[#allocation5 + $0x228] sm:$0xff]  ;;  %v70_v30 = vld [vmem:[#allocation5 + $0xb8] sm:$0xff]  ;;  %v1181_v34 = vpack.c.bf16 %v82_v29, %v58_v28  ;;  %v81_v39 = vld [vmem:[#allocation5 + $0x110] sm:$0xff] }
  0x42   :  { %v140_v15 = vld [vmem:[#allocation5 + $0x2e8] sm:$0xff]  ;;  %v94_v31 = vld [vmem:[#allocation5 + $0x178] sm:$0xff]  ;;  %v93_v41 = vld [vmem:[#allocation5 + $0x170] sm:$0xff] }
  0x43   :  { %1156 = vmatpush1.bf16.xpose.msra.mxu1 %v1155_v4  ;;  %v1221_v4 = vpack.c.bf16 %v92_v0, %v68_v63  ;;  %v106_v42 = vld [vmem:[#allocation5 + $0x1d8] sm:$0xff]  ;;  %v141_v57 = vld [vmem:[#allocation5 + $0x2f0] sm:$0xff] }
  0x44   :  { %1158 = vmatprep.subr.bf16.mxu1 %v1157_v6  ;;  %v46_v6 = vld [vmem:[#allocation2 + $0x28] sm:$0xff]  ;;  %v1140_v59 = vld [vmem:[%s1431_s2] ss:$0 sm:$0xff] }
  0x45   :  { %1204 = vmatpush1.bf16.xpose.msra.mxu0 %v1203_v5  ;;  %v43_v5 = vld [vmem:[#allocation2 + $0x10] sm:$0xff]  ;;  %v130_v43 = vld [vmem:[#allocation5 + $0x298] sm:$0xff] }
  0x46   :  { %1206 = vmatprep.subr.bf16.mxu0 %v1205_v7  ;;  %v55_v7 = vld [vmem:[#allocation5 + $0x40] sm:$0xff]  ;;  %v197_v13 = vrot.slane %v43_v5, %v1400_v17 }
  0x47   :  { %v1175_v18 = vpack.c.bf16 %v79_v8, %v55_v7 }
  0x4a   :  { %417 = vmatmul.mubr.f32.vlgmr.msra.gmra.mrb[0].mxu1 %v170_v50  ;;  %v238_v50 = vrot.slane %v224_v40, %v1400_v17  ;;  %v69_v40 = vld [vmem:[#allocation5 + $0xb0] sm:$0xff] }
  0x4b   :  { %1160 = vmatpush1.bf16.xpose.msra.mxu1 %v1159_v21  ;;  %486 = vmatprep.mubr.f32.mxu1 %v188_v25  ;;  %v1225_v21 = vpack.c.bf16 %v140_v15, %v116_v14  ;;  %v127_v25 = vld [vmem:[#allocation5 + $0x280] sm:$0xff]  ;;  %v1231_v49 = vpack.c.bf16 %v93_v41, %v69_v40 }
  0x4c   :  { %837 = vmatmul.mubr.f32.vlgmr.msra.gmra.mrb[0].mxu0 %v221_v53  ;;  %1162 = vmatprep.subr.bf16.mxu1 %v1161_v23  ;;  %v1169_v53 = vpack.c.bf16 %v126_v46, %v102_v45  ;;  %v240_v56 = vcombine.high %v238_v50, %v238_v50  ;;  %v118_v45 = vld [vmem:[#allocation5 + $0x238] sm:$0xff] }
  0x4d   :  { %1208 = vmatpush1.bf16.xpose.msra.mxu0 %v1207_v22  ;;  %906 = vmatprep.mubr.f32.mxu0 %v239_v26  ;;  %v205_v22 = vcombine.high %v197_v13, %v197_v13  ;;  %v115_v26 = vld [vmem:[#allocation5 + $0x220] sm:$0xff]  ;;  %v142_v46 = vld [vmem:[#allocation5 + $0x2f8] sm:$0xff] }
  0x4e   :  { %1210 = vmatprep.subr.bf16.mxu0 %v1209_v24  ;;  %v103_v24 = vld [vmem:[#allocation5 + $0x1c0] sm:$0xff]  ;;  %v1227_v33 = vpack.c.bf16 %v139_v27, %v115_v26 }
  0x4f   :  { %v1179_v32 = vpack.c.bf16 %v127_v25, %v103_v24 }
  0x53   :  { %1164 = vmatpush1.bf16.xpose.msra.mxu1 %v1163_v35  ;;  %v1229_v35 = vpack.c.bf16 %v94_v31, %v70_v30 }
  0x54   :  { %1166 = vmatprep.subr.bf16.mxu1 %v1165_v37  ;;  %v241_v37 = vcombine.high %v46_v6, %v46_v6 }
  0x55   :  { %1212 = vmatpush1.bf16.xpose.msra.mxu0 %v1211_v36  ;;  %v190_v36 = vcombine.high %v43_v5, %v43_v5 }
  0x56   :  { %1214 = vmatprep.subr.bf16.mxu0 %v1213_v38  ;;  %v57_v38 = vld [vmem:[#allocation5 + $0x50] sm:$0xff] }
  0x57   :  { %v204_v44 = vrot.slane %v190_v36, %v1400_v17  ;;  %v1183_v48 = vpack.c.bf16 %v81_v39, %v57_v38 }
  0x5a   :  { %487 = vmatmul.mubr.f32.vlgmr.msra.gmra.mrb[0].mxu1 %v180_v16  ;;  %v248_v16 = vrot.slane %v46_v6, %v1400_v17 }
  0x5b   :  { %1168 = vmatpush1.bf16.xpose.msra.mxu1 %v1167_v51  ;;  %556 = vmatprep.mubr.f32.mxu1 %v189_v55  ;;  %v1233_v51 = vpack.c.bf16 %v142_v46, %v118_v45  ;;  %v129_v55 = vld [vmem:[#allocation5 + $0x290] sm:$0xff] }
  0x5c   :  { %907 = vmatmul.mubr.f32.vlgmr.msra.gmra.mrb[0].mxu0 %v231_v20  ;;  %1170 = vmatprep.subr.bf16.mxu1 %v1169_v53  ;;  %v1177_v20 = vpack.c.bf16 %v128_v12, %v104_v11  ;;  %v256_v23 = vcombine.high %v248_v16, %v248_v16 }
  0x5d   :  { %1216 = vmatpush1.bf16.xpose.msra.mxu0 %v1215_v52  ;;  %976 = vmatprep.mubr.f32.mxu0 %v240_v56  ;;  %v206_v52 = vcombine.high %v204_v44, %v204_v44  ;;  %v117_v56 = vld [vmem:[#allocation5 + $0x230] sm:$0xff] }
  0x5e   :  { %1218 = vmatprep.subr.bf16.mxu0 %v1217_v54  ;;  %v105_v54 = vld [vmem:[#allocation5 + $0x1d0] sm:$0xff] }
  0x5f   :  { %v1187_v58 = vpack.c.bf16 %v129_v55, %v105_v54 }
  0x63   :  { %1172 = vmatpush1.bf16.xpose.msra.mxu1 %v1171_v1 }
  0x64   :  { %1174 = vmatprep.subr.bf16.mxu1 %v1173_v3 }
  0x65   :  { %1220 = vmatpush1.bf16.xpose.msra.mxu0 %v1219_v2 }
  0x66   :  { %1222 = vmatprep.subr.bf16.mxu0 %v1221_v4 }
  0x6a   :  { %557 = vmatmul.mubr.f32.vlgmr.msra.gmra.mrb[0].mxu1 %v187_v47  ;;  %v255_v47 = vrot.slane %v241_v37, %v1400_v17  ;;  %v1235_v17 = vpack.c.bf16 %v141_v57, %v117_v56 }
  0x6b   :  { %1176 = vmatpush1.bf16.xpose.msra.mxu1 %v1175_v18  ;;  %626 = vmatprep.mubr.f32.mxu1 %v205_v22 }
  0x6c   :  { %977 = vmatmul.mubr.f32.vlgmr.msra.gmra.mrb[0].mxu0 %v238_v50  ;;  %1178 = vmatprep.subr.bf16.mxu1 %v1177_v20  ;;  %v1185_v50 = vpack.c.bf16 %v130_v43, %v106_v42  ;;  %v257_v53 = vcombine.high %v255_v47, %v255_v47 }
  0x6d   :  { %1224 = vmatpush1.bf16.xpose.msra.mxu0 %v1223_v19  ;;  %1046 = vmatprep.mubr.f32.mxu0 %v256_v23 }
  0x6e   :  { %1226 = vmatprep.subr.bf16.mxu0 %v1225_v21 }
  0x73   :  { %1180 = vmatpush1.bf16.xpose.msra.mxu1 %v1179_v32 }
  0x74   :  { %1182 = vmatprep.subr.bf16.mxu1 %v1181_v34 }
  0x75   :  { %1228 = vmatpush1.bf16.xpose.msra.mxu0 %v1227_v33 }
  0x76   :  { %1230 = vmatprep.subr.bf16.mxu0 %v1229_v35 }
  0x7a   :  { %627 = vmatmul.mubr.f32.vlgmr.msra.gmra.mrb[0].mxu1 %v197_v13 }
  0x7b   :  { %1184 = vmatpush1.bf16.xpose.msra.mxu1 %v1183_v48  ;;  %696 = vmatprep.mubr.f32.mxu1 %v206_v52 }
  0x7c   :  { %1047 = vmatmul.mubr.f32.vlgmr.msra.gmra.mrb[0].mxu0 %v248_v16  ;;  %1186 = vmatprep.subr.bf16.mxu1 %v1185_v50 }
  0x7d   :  { %1232 = vmatpush1.bf16.xpose.msra.mxu0 %v1231_v49  ;;  %1116 = vmatprep.mubr.f32.mxu0 %v257_v53 }
  0x7e   :  { %1234 = vmatprep.subr.bf16.mxu0 %v1233_v51 }
  0x83   :  { %1188 = vmatpush1.bf16.xpose.msra.mxu1 %v1187_v58 }
  0x85   :  { %1236 = vmatpush1.bf16.xpose.msra.mxu0 %v1235_v17 }
  0x8a   :  { %697 = vmatmul.mubr.f32.vlgmr.msra.gmra.mrb[0].mxu1 %v204_v44 }
  0x8c   :  { %1117 = vmatmul.mubr.f32.vlgmr.msra.gmra.mrb[0].mxu0 %v255_v47 }
 0x15d   :  { %v698_v60 = vpop.f32.mrb[0].mxu1 }
 0x15e   :  { %v1237_v61 = vadd.f32 %v1140_v59, %v698_v60  ;;  %v700_v63 = vpop.f32.mrb[1].mxu1 }
 0x15f   :  { %v1118_v62 = vpop.f32.mrb[0].mxu0 }
 0x160   :  { %v1120_v0 = vpop.f32.mrb[1].mxu0  ;;  %v1238_v1 = vadd.f32 %v1237_v61, %v1118_v62 }
 0x162   :  { %1123 = vst.msk [vmem:[#allocation7] sm:$0x3] %vm1122_vm0, %v1238_v1 }
 0x163   :  { %1326 = shalt.err (!%p1323_p6)
}
 0x164   :  { %s1327_s15 = scalar_lea.hbm %s1432_s3, 32 }
 0x165   :  { %p1328_p7 = scmp.ne.s32.totalorder %s1432_s3, %s1327_s15  ;;  %p1331_p8 = scmp.lt.u32.totalorder %s1327_s15, %s1432_s3 }
 0x167   :  { %p1333_p9 = pnand %p1331_p8, %p1328_p7 }
 0x169   :  { %1336 = shalt.err (!%p1333_p9)
}
 0x16a   :  { %1133 = dma.vmem_to_hbm [thread:$0]  %s1131_s12, 32, %s1432_s3, [#allocation4]  }
 0x16b   :  { %1341 = dma.done.wait [#allocation4], 32  }
 0x16c   :  { %1342 = vsyncadd [#allocation4], 4294967264 }
 0x16d   :  { %1137 = vsyncpa [#allocation3], 1 }
 0x16e   :  { %1138 = vsyncpa [#allocation6], 1 }
 0x16f   :  { %1139 = vsyncpa [#allocation4], 1 }

</bundles_post_ra>
